<compile_context>
chip_gen: v7x
topology: tpu7x:2x2x1
jax: 0.10.0
libtpu: 0.0.40
codegen_flags: <defaults>
</compile_context>

<pallas_src>
import math

import jax
import jax.numpy as jnp
from jax.experimental import pallas as pl
from jax.experimental.pallas import tpu as pltpu

NUM_CLASSES = 16  # fixed by the module: nn.Parameter(torch.FloatTensor(16, embed_dim))
PACK = 8          # node rows packed per lane-dense output row (8 * 16 = 128 lanes)


def _round_up(x, m):
    return ((x + m - 1) // m) * m


def _vmem_capacity_bytes():
    try:
        return int(pltpu.get_tpu_info().vmem_capacity_bytes)
    except Exception:
        return 64 * 1024 * 1024  # conservative fallback (v7x per-TC VMEM)


def graph_encoding_kernel(feat_ref, w_ref, out_ref):
    # feat_ref: (tile_g, 8F)   packed node features (8 node rows per packed row)
    # w_ref   : (8F, 128)      bf16 block-diagonal folded weight kron(I_8, (weight@enc_w).T)
    # out_ref : (tile_g, 128)  f32  packed rows of scores.t() (lane-dense store)
    out_ref[...] = jnp.dot(
        feat_ref[...].astype(jnp.bfloat16),
        w_ref[...],
        preferred_element_type=jnp.float32,
    )


def graph_encoding(feats, enc_w, weight, *, target_tile_bytes=2 << 20):
    """feats: (N, F) bf16/f32, enc_w: (D, F) f32, weight: (16, D) f32 -> (N, 16) f32."""
    N, F = feats.shape
    D = enc_w.shape[0]
    assert enc_w.shape == (D, F)
    assert weight.shape == (NUM_CLASSES, D)
    assert PACK * NUM_CLASSES == 128

    # ---- Fold the constant parameter matrices (trace-time work on parameters).
    w_folded = jnp.dot(
        weight.astype(jnp.float32), enc_w.astype(jnp.float32),
        precision=jax.lax.Precision.HIGHEST,
    ).T                                                           # (F, 16)
    w_bd = jnp.kron(jnp.eye(PACK, dtype=jnp.float32), w_folded)   # (8F, 128) block-diag
    w_bd = w_bd.astype(jnp.bfloat16)

    # ---- Pack node rows: (N, F) -> (N/8, 8F). Contiguous reshape = no HBM copy.
    n8 = _round_up(N, PACK)
    if n8 != N:
        # Only the ragged tail (<8 rows). Callers at graph scale should
        # 8-align node batches so this full-copy pad never triggers.
        feats = jnp.pad(feats, ((0, n8 - N), (0, 0)))
    feats_packed = feats.reshape(n8 // PACK, PACK * F)
    G = n8 // PACK
    packed_cols = PACK * F
    feat_itemsize = jnp.dtype(feats_packed.dtype).itemsize

    # ---- Tile size: aim for ~target_tile_bytes per feats DMA step, then clamp
    #      against a generation-aware VMEM budget.
    vmem_cap = _vmem_capacity_bytes()
    tile_g = max(PACK, (target_tile_bytes // (packed_cols * feat_itemsize)) // PACK * PACK)

    def _budget(tg):
        return (
            2 * tg * packed_cols * feat_itemsize   # feats tiles, double-buffered
            + 2 * packed_cols * 128 * 2            # bf16 block-diag weight (resident)
            + 2 * tg * 128 * 4                     # f32 packed output tiles
        )

    while tile_g > PACK and _budget(tile_g) > int(0.7 * vmem_cap):
        tile_g = max(PACK, (tile_g // 2) // PACK * PACK)
    if tile_g >= G:
        tile_g = G  # single step covering the whole (small) problem; block == full dim
    vmem_limit = int(min(0.85 * vmem_cap, max(_budget(tile_g) + (4 << 20), 16 << 20)))

    grid = (pl.cdiv(G, tile_g),)

    # Advisory cost estimate (actual MXU work incl. the zero blocks).
    rows_done = grid[0] * tile_g
    flops = 2 * rows_done * packed_cols * 128
    bytes_accessed = (
        G * packed_cols * feat_itemsize   # feats read
        + packed_cols * 128 * 2           # bf16 weight read
        + G * 128 * 4                     # f32 packed output write
    )

    out_packed = pl.pallas_call(
        graph_encoding_kernel,
        out_shape=jax.ShapeDtypeStruct((G, 128), jnp.float32),
        grid=grid,
        in_specs=[
            pl.BlockSpec((tile_g, packed_cols), lambda i: (i, 0)),  # streamed row tiles
            pl.BlockSpec((packed_cols, 128), lambda i: (0, 0)),     # resident folded weight
        ],
        out_specs=pl.BlockSpec((tile_g, 128), lambda i: (i, 0)),
        compiler_params=pltpu.CompilerParams(
            dimension_semantics=("parallel",),
            vmem_limit_bytes=vmem_limit,
        ),
        cost_estimate=pl.CostEstimate(
            flops=flops, transcendentals=0, bytes_accessed=bytes_accessed
        ),
    )(feats_packed, w_bd)

    # (G, 128) row-major == (n8, 16) row-major: free reshape, then drop tail rows.
    return out_packed.reshape(n8, NUM_CLASSES)[:N]


def xavier_uniform(key, shape):
    fan_out, fan_in = shape
    bound = math.sqrt(6.0 / (fan_in + fan_out))
    return jax.random.uniform(key, shape, jnp.float32, minval=-bound, maxval=bound)


if __name__ == "__main__":
    # Small shapes consistent with the forward pass.
    num_total_nodes = 128  # size of the synthetic feature table
    num_nodes = 64         # |nodes| in the batch (8-aligned: avoids tail pad)
    feat_dim = 64
    embed_dim = 32

    key = jax.random.PRNGKey(0)
    k_feat, k_enc, k_w, k_nodes = jax.random.split(key, 4)

    # Feature table kept bf16 upstream so the gathered feats stream is already
    # bf16 (halves kernel HBM bytes; no wrapper-side cast pass).
    feat_table = jax.random.normal(
        k_feat, (num_total_nodes, feat_dim), jnp.float32
    ).astype(jnp.bfloat16)
    enc_w = xavier_uniform(k_enc, (embed_dim, feat_dim))        # synthetic encoder weight
    weight = xavier_uniform(k_w, (NUM_CLASSES, embed_dim))      # GraphEncoding.weight
    nodes = jax.random.randint(k_nodes, (num_nodes,), 0, num_total_nodes)

    # Glue: feature gather for `nodes` (see TODO(synk) about moving in-kernel).
    feats = feat_table[nodes]                                   # (N, F) bf16

    out = jax.block_until_ready(graph_encoding(feats, enc_w, weight))
    assert out.shape == (num_nodes, NUM_CLASSES)

    feats_f32 = feats.astype(jnp.float32)

    # Reference 1: original torch math order, pure f32 (loose tolerance covers
    # the kernel's bf16 weight rounding).
    ref_f32 = (weight @ (enc_w @ feats_f32.T)).T                # (N, 16)
    assert jnp.allclose(out, ref_f32, atol=5e-2, rtol=5e-2), "mismatch vs f32 reference"

    # Reference 2: same folding + bf16 weight rounding as the kernel (tight check).
    w_folded_bf = (
        jnp.dot(weight, enc_w, precision=jax.lax.Precision.HIGHEST)
        .T.astype(jnp.bfloat16).astype(jnp.float32)
    )
    ref_bf = jnp.dot(feats_f32, w_folded_bf, precision=jax.lax.Precision.HIGHEST)
    assert jnp.allclose(out, ref_bf, atol=2e-3, rtol=2e-3), "mismatch vs bf16-matched reference"

    print("KERNEL_OK")
</pallas_src>

<mosaic_0001>
module attributes {stable_mosaic.version = 11 : i64} {
  func.func @graph_encoding_kernel(%arg0: i32, %arg1: memref<8x512xbf16, #tpu.memory_space<vmem>>, %arg2: memref<512x128xbf16, #tpu.memory_space<vmem>>, %arg3: memref<8x128xf32, #tpu.memory_space<vmem>>) attributes {dimension_semantics = [#tpu.dimension_semantics<parallel>], iteration_bounds = array<i64: 1>, scalar_prefetch = 0 : i64, scratch_operands = 0 : i64, tpu.core_type = #tpu.core_type<tc>, window_params = [{transform_indices = @transform_0, window_bounds = array<i64: 8, 512>}, {pipeline_mode = #tpu.pipeline_mode<synchronous>, transform_indices = @transform_1, window_bounds = array<i64: 512, 128>}, {transform_indices = @transform_2, window_bounds = array<i64: 8, 128>}]} {
    %c0 = arith.constant 0 : index
    %c0_0 = arith.constant 0 : index
    %0 = vector.load %arg1[%c0, %c0_0] : memref<8x512xbf16, #tpu.memory_space<vmem>>, vector<8x512xbf16>
    %c0_1 = arith.constant 0 : index
    %c0_2 = arith.constant 0 : index
    %1 = vector.load %arg2[%c0_1, %c0_2] : memref<512x128xbf16, #tpu.memory_space<vmem>>, vector<512x128xbf16>
    %cst = arith.constant dense<0.000000e+00> : vector<8x128xf32>
    %2 = tpu.matmul %0, %1, %cst {dimension_numbers = #tpu.dot_dimension_numbers<[1], [0], [0], [1], [0, 0, 1, 1], [], []>} : vector<8x512xbf16>, vector<512x128xbf16>, vector<8x128xf32> -> vector<8x128xf32>
    %c0_3 = arith.constant 0 : index
    %c0_4 = arith.constant 0 : index
    %3 = vector.load %arg3[%c0_3, %c0_4] : memref<8x128xf32, #tpu.memory_space<vmem>>, vector<8x128xf32>
    tpu.vector_store %arg3[%c0_3, %c0_4], %2 {strides = array<i32>} : memref<8x128xf32, #tpu.memory_space<vmem>>, vector<8x128xf32>,
    return
  }
  func.func @transform_0(%arg0: i32) -> (i32, i32) {
    %c0_i32 = arith.constant 0 : i32
    %c0_i32_0 = arith.constant 0 : i32
    return %arg0, %c0_i32 : i32, i32
  }
  func.func @transform_1(%arg0: i32) -> (i32, i32) {
    %c0_i32 = arith.constant 0 : i32
    %c0_i32_0 = arith.constant 0 : i32
    %c0_i32_1 = arith.constant 0 : i32
    return %c0_i32, %c0_i32_0 : i32, i32
  }
  func.func @transform_2(%arg0: i32) -> (i32, i32) {
    %c0_i32 = arith.constant 0 : i32
    %c0_i32_0 = arith.constant 0 : i32
    return %arg0, %c0_i32 : i32, i32
  }
}

</mosaic_0001>

<bundles_post_ra>
// kernel: tpu_custom_call.1
= control target key start
LH: loop header
LB: loop body
LE: loop exit
PB: predicated region body
PF: predicated region fallthrough
CT: control target
= control target key end

     0   :  { %7 = vsyncpa [#allocation3], 0  ;;  %s664_s0 = inlined_call_operand.hbm [shape: bf16[8,512], index: 0, kind: input, shape index: {}]   ;;  %s665_s1 = inlined_call_operand.hbm [shape: bf16[512,128], index: 1, kind: input, shape index: {}]   ;;  %s666_s2 = inlined_call_operand.hbm [shape: f32[8,128], index: 2, kind: output, shape index: {}]  }
   0x1   :  { %8 = vsyncpa [#allocation6], 0 }
   0x2   :  { %9 = vsyncpa [#allocation4], 0  ;;  %s601_s9 = smov [#allocation2]   ;;  %s602_s11 = smov [#allocation5]  }
   0x3   :  { %s16_s10 = sshll.u32 %s601_s9, 4  ;;  %s25_s12 = sshll.u32 %s602_s11, 4  ;;  %s17_s10 = int_to_ptr.vmem [resolvable:$true] %s16_s10  ;;  %s621_s12 = int_to_ptr.vmem [resolvable:$true] %s25_s12 }
   0x4   :  { %s529_s15 = scalar_lea.hbm %s664_s0, 256 }
   0x5   :  { %p530_p0 = scmp.ne.s32.totalorder %s664_s0, %s529_s15  ;;  %p533_p1 = scmp.lt.u32.totalorder %s529_s15, %s664_s0 }
   0x7   :  { %p535_p2 = pnand %p533_p1, %p530_p0 }
   0x9   :  { %538 = shalt.err (!%p535_p2)
}
   0xa   :  { %s539_s20 = scalar_lea.vmem %s17_s10, 256  ;;  %p544_p4 = scmp.lt.s32.totalorder %s17_s10, %s17_s10 }
   0xb   :  { %p540_p3 = scmp.ne.s32.totalorder %s17_s10, %s539_s20  ;;  %p545_p5 = scmp.lt.s32.totalorder %s539_s20, %s539_s20 }
   0xd   :  { %p546_p6 = por %p545_p5, %p544_p4 }
   0xf   :  { %p547_p7 = pnand %p546_p6, %p540_p3 }
  0x11   :  { %550 = shalt.err (!%p547_p7)
}
  0x12   :  { %19 = dma.hbm_to_vmem [thread:$0]  %s664_s0, 256, %s17_s10, [#allocation3]  }
  0x13   :  { %s551_s25 = scalar_lea.hbm %s665_s1, 4096 }
  0x14   :  { %p552_p8 = scmp.ne.s32.totalorder %s665_s1, %s551_s25  ;;  %p555_p9 = scmp.lt.u32.totalorder %s551_s25, %s665_s1 }
  0x16   :  { %p557_p10 = pnand %p555_p9, %p552_p8 }
  0x18   :  { %560 = shalt.err (!%p557_p10)
}
  0x19   :  { %s561_s30 = scalar_lea.vmem %s621_s12, 4096  ;;  %p566_p12 = scmp.lt.s32.totalorder %s621_s12, %s621_s12 }
  0x1a   :  { %p562_p11 = scmp.ne.s32.totalorder %s621_s12, %s561_s30  ;;  %p567_p13 = scmp.lt.s32.totalorder %s561_s30, %s561_s30 }
  0x1c   :  { %p568_p0 = por %p567_p13, %p566_p12 }
  0x1e   :  { %p569_p1 = pnand %p568_p0, %p562_p11 }
  0x20   :  { %572 = shalt.err (!%p569_p1)
}
  0x21   :  { %s603_s0 = smov 64   ;;  %s604_s3 = smov 4  }
  0x22   :  { %31 = dma.hbm_to_vmem [thread:$0]  %s665_s1, 4096, %s621_s12, [#allocation6], %s603_s0, %s603_s0, %s604_s3  }
  0x23   :  { %595 = dma.done.wait [#allocation3], 256  }
  0x24   :  { %596 = vsyncadd [#allocation3], 4294967040 }
  0x25   :  { %597 = dma.done.wait [#allocation6], 4096  }
  0x26   :  { %598 = vsyncadd [#allocation6], 4294963200  ;;  %v493_v0 = vld [vmem:[#allocation5 + $0x40] sm:$0xff]   ;;  %v497_v4 = vld [vmem:[#allocation5 + $0x48] sm:$0xff]   ;;  %s605_s1 = smov [#allocation7]  }
  0x27   :  { %v494_v1 = vld [vmem:[#allocation5 + $0xc0] sm:$0xff]   ;;  %444 = vmatprep.subr.bf16.mxu0 %v493_v0  ;;  %v498_v5 = vld [vmem:[#allocation5 + $0xc8] sm:$0xff]   ;;  %v501_v8 = vld [vmem:[#allocation5 + $0x50] sm:$0xff]   ;;  %s398_s6 = sshll.u32 %s605_s1, 4  ;;  %s399_s6 = int_to_ptr.vmem [resolvable:$true] %s398_s6 }
  0x28   :  { %v495_v2 = vld [vmem:[#allocation5] sm:$0xff]   ;;  %466 = vmatprep.subr.bf16.mxu1 %v494_v1  ;;  %v499_v6 = vld [vmem:[#allocation5 + $0x8] sm:$0xff]   ;;  %v502_v9 = vld [vmem:[#allocation5 + $0xd0] sm:$0xff]   ;;  %s573_s7 = scalar_lea.vmem %s399_s6, 128  ;;  %p578_p3 = scmp.lt.s32.totalorder %s399_s6, %s399_s6 }
  0x29   :  { %v496_v3 = vld [vmem:[#allocation5 + $0x80] sm:$0xff]   ;;  %445 = vmatpush3.bf16.msra.mxu0 %v495_v2  ;;  %v500_v7 = vld [vmem:[#allocation5 + $0x88] sm:$0xff]   ;;  %v503_v10 = vld [vmem:[#allocation5 + $0x10] sm:$0xff]   ;;  %p574_p2 = scmp.ne.s32.totalorder %s399_s6, %s573_s7  ;;  %p579_p4 = scmp.lt.s32.totalorder %s573_s7, %s573_s7 }
  0x2a   :  { %467 = vmatpush3.bf16.msra.mxu1 %v496_v3  ;;  %446 = vmatprep.subr.bf16.mxu0 %v497_v4  ;;  %v504_v11 = vld [vmem:[#allocation5 + $0x90] sm:$0xff]   ;;  %v505_v12 = vld [vmem:[#allocation5 + $0x58] sm:$0xff]   ;;  %v509_v16 = vld [vmem:[#allocation5 + $0x60] sm:$0xff]  }
  0x2b   :  { %468 = vmatprep.subr.bf16.mxu1 %v498_v5  ;;  %v506_v13 = vld [vmem:[#allocation5 + $0xd8] sm:$0xff]   ;;  %v510_v17 = vld [vmem:[#allocation5 + $0xe0] sm:$0xff]   ;;  %v513_v20 = vld [vmem:[#allocation5 + $0x68] sm:$0xff]   ;;  %p580_p5 = por %p579_p4, %p578_p3 }
  0x2c   :  { %v507_v14 = vld [vmem:[#allocation5 + $0x18] sm:$0xff]   ;;  %v511_v18 = vld [vmem:[#allocation5 + $0x20] sm:$0xff]   ;;  %v514_v21 = vld [vmem:[#allocation5 + $0xe8] sm:$0xff]  }
  0x2d   :  { %447 = vmatpush3.bf16.msra.mxu0 %v499_v6  ;;  %v508_v15 = vld [vmem:[#allocation5 + $0x98] sm:$0xff]   ;;  %v512_v19 = vld [vmem:[#allocation5 + $0xa0] sm:$0xff]   ;;  %v515_v22 = vld [vmem:[#allocation5 + $0x28] sm:$0xff]   ;;  %p581_p6 = pnand %p580_p5, %p574_p2 }
  0x2e   :  { %469 = vmatpush3.bf16.msra.mxu1 %v500_v7  ;;  %448 = vmatprep.subr.bf16.mxu0 %v501_v8  ;;  %v516_v23 = vld [vmem:[#allocation5 + $0xa8] sm:$0xff]   ;;  %v517_v24 = vld [vmem:[#allocation5 + $0x70] sm:$0xff]   ;;  %v521_v28 = vld [vmem:[#allocation5 + $0x78] sm:$0xff]  }
  0x2f   :  { %470 = vmatprep.subr.bf16.mxu1 %v502_v9  ;;  %v518_v25 = vld [vmem:[#allocation5 + $0xf0] sm:$0xff]   ;;  %v522_v29 = vld [vmem:[#allocation5 + $0xf8] sm:$0xff]  }
  0x30   :  { %v519_v26 = vld [vmem:[#allocation5 + $0x30] sm:$0xff]   ;;  %v523_v30 = vld [vmem:[#allocation5 + $0x38] sm:$0xff]  }
  0x31   :  { %449 = vmatpush3.bf16.msra.mxu0 %v503_v10  ;;  %v520_v27 = vld [vmem:[#allocation5 + $0xb0] sm:$0xff]   ;;  %v524_v31 = vld [vmem:[#allocation5 + $0xb8] sm:$0xff]  }
  0x32   :  { %471 = vmatpush3.bf16.msra.mxu1 %v504_v11  ;;  %450 = vmatprep.subr.bf16.mxu0 %v505_v12  ;;  %v39_v32 = vld [vmem:[#allocation2] sm:$0xff]  ;;  %v40_v33 = vld [vmem:[#allocation2 + $0x8] sm:$0xff] }
  0x33   :  { %472 = vmatprep.subr.bf16.mxu1 %v506_v13  ;;  %v408_v34 = vcombine.low %v39_v32, %v39_v32  ;;  %v409_v35 = vcombine.high %v39_v32, %v39_v32  ;;  %v410_v36 = vcombine.low %v40_v33, %v40_v33  ;;  %v411_v37 = vcombine.high %v40_v33, %v40_v33 }
  0x35   :  { %451 = vmatpush3.bf16.msra.mxu0 %v507_v14  ;;  %343 = vmatprep.mubr.bf16.mxu0 %v409_v35 }
  0x36   :  { %473 = vmatpush3.bf16.msra.mxu1 %v508_v15  ;;  %452 = vmatprep.subr.bf16.mxu0 %v509_v16 }
  0x37   :  { %474 = vmatprep.subr.bf16.mxu1 %v510_v17  ;;  %383 = vmatprep.mubr.bf16.mxu1 %v411_v37 }
  0x39   :  { %453 = vmatpush3.bf16.msra.mxu0 %v511_v18 }
  0x3a   :  { %475 = vmatpush3.bf16.msra.mxu1 %v512_v19  ;;  %454 = vmatprep.subr.bf16.mxu0 %v513_v20 }
  0x3b   :  { %476 = vmatprep.subr.bf16.mxu1 %v514_v21 }
  0x3d   :  { %455 = vmatpush3.bf16.msra.mxu0 %v515_v22 }
  0x3e   :  { %477 = vmatpush3.bf16.msra.mxu1 %v516_v23  ;;  %456 = vmatprep.subr.bf16.mxu0 %v517_v24 }
  0x3f   :  { %478 = vmatprep.subr.bf16.mxu1 %v518_v25 }
  0x41   :  { %457 = vmatpush3.bf16.msra.mxu0 %v519_v26 }
  0x42   :  { %479 = vmatpush3.bf16.msra.mxu1 %v520_v27  ;;  %458 = vmatprep.subr.bf16.mxu0 %v521_v28 }
  0x43   :  { %480 = vmatprep.subr.bf16.mxu1 %v522_v29 }
  0x45   :  { %459 = vmatpush3.bf16.msra.mxu0 %v523_v30 }
  0x46   :  { %481 = vmatpush3.bf16.msra.mxu1 %v524_v31 }
  0x48   :  { %344 = vmatmul.mubr.bf16.vlgmr.msra.gmra.mrb[0].mxu0 %v408_v34 }
  0x49   :  { %384 = vmatmul.mubr.bf16.vlgmr.msra.gmra.mrb[0].mxu1 %v410_v36 }
 0x11b   :  { %v460_v38 = vpop.f32.mrb[0].mxu0 }
 0x11c   :  { %v482_v39 = vpop.f32.mrb[0].mxu1  ;;  %v461_v40 = vpop.f32.mrb[1].mxu0 }
 0x11d   :  { %v483_v41 = vpop.f32.mrb[1].mxu1  ;;  %v462_v42 = vadd.f32 %v461_v40, %v460_v38  ;;  %v463_v44 = vpop.f32.mrb[2].mxu0 }
 0x11e   :  { %v484_v43 = vadd.f32 %v483_v41, %v482_v39  ;;  %v485_v45 = vpop.f32.mrb[2].mxu1  ;;  %v464_v46 = vpop.f32.mrb[3].mxu0 }
 0x11f   :  { %v486_v47 = vpop.f32.mrb[3].mxu1 }
 0x120   :  { %v386_v48 = vadd.f32 %v484_v43, %v462_v42 }
 0x122   :  { %391 = vst [vmem:[#allocation7] sm:$0xff] %v386_v48 }
 0x123   :  { %584 = shalt.err (!%p581_p6)
}
 0x124   :  { %s585_s10 = scalar_lea.hbm %s666_s2, 128 }
 0x125   :  { %p586_p7 = scmp.ne.s32.totalorder %s666_s2, %s585_s10  ;;  %p589_p8 = scmp.lt.u32.totalorder %s585_s10, %s666_s2 }
 0x127   :  { %p591_p9 = pnand %p589_p8, %p586_p7 }
 0x129   :  { %594 = shalt.err (!%p591_p9)
}
 0x12a   :  { %401 = dma.vmem_to_hbm [thread:$0]  %s399_s6, 128, %s666_s2, [#allocation4]  }
 0x12b   :  { %599 = dma.done.wait [#allocation4], 128  }
 0x12c   :  { %600 = vsyncadd [#allocation4], 4294967168 }
 0x12d   :  { %405 = vsyncpa [#allocation3], 1 }
 0x12e   :  { %406 = vsyncpa [#allocation6], 1 }
 0x12f   :  { %407 = vsyncpa [#allocation4], 1 }

</bundles_post_ra>
